<compile_context>
chip_gen: v5e
topology: v5e:2x2
jax: 0.10.0
libtpu: 0.0.40
codegen_flags: <defaults>
</compile_context>

<pallas_src>
import jax
import jax.numpy as jnp
import numpy as np
from jax.experimental import pallas as pl
from jax.experimental.pallas import tpu as pltpu


def _dempster_kernel(x_ref, o_ref):
    # x_ref: (P, C, Bt) tile in VMEM  (C = num_class + 1, omega at row -1)
    # o_ref: (C, Bt)
    n_protos = x_ref.shape[0]
    n_c = x_ref.shape[1]

    def _row_sum(m):
        # explicit sublane-row adds (C is tiny) instead of a cross-lane reduce
        t = m[0:1, :]
        for c in range(1, n_c):
            t = t + m[c:c + 1, :]
        return t

    m1 = x_ref[0].astype(jnp.float32)          # (C, Bt)
    omega1 = m1[-1:, :]                        # (1, Bt)

    # n_prototypes is small and static -> fully unrolled serial combination.
    # Normalization is deferred (combine is homogeneous deg-1 in m1).
    for i in range(1, n_protos):
        m2 = x_ref[i].astype(jnp.float32)      # (C, Bt)
        omega2 = m2[-1:, :]                    # (1, Bt)
        m1 = m1 * (m2 + omega2) + omega1 * m2  # 2 muls + 2 adds per step
        omega1 = m1[-1:, :]
        if i % 8 == 0:
            # periodic renorm only matters for large P (avoids underflow);
            # exact up to fp rounding, never triggers for small P.
            m1 = m1 * pl.reciprocal(_row_sum(m1), approx=False)
            omega1 = m1[-1:, :]

    total = _row_sum(m1)                       # (1, Bt)
    m1 = m1 * pl.reciprocal(total, approx=False)
    o_ref[...] = m1.astype(o_ref.dtype)


def ds3_dempster(x, *, batch_tile=None):
    """x: (..., P, C) array of prototype mass functions.  Returns (..., C)."""
    *lead, P, C = x.shape
    B = int(np.prod(lead)) if lead else 1
    xf = jnp.reshape(x, (B, P, C))

    if batch_tile is None:
        # Lane-dense tiles; prefer >=2 grid steps (pipelining, v7x megacore)
        # while keeping double-buffered VMEM tiles tiny.
        if B <= 256:
            batch_tile = 128
        else:
            batch_tile = min(2048, 128 * pl.cdiv(pl.cdiv(B, 2), 128))
    batch_tile = int(128 * pl.cdiv(max(int(batch_tile), 1), 128))

    Bp = batch_tile * pl.cdiv(B, batch_tile)
    if Bp != B:
        # pad with a valid (nonzero) mass so the deferred normalization
        # never divides by zero in the discarded padding lanes.
        xf = jnp.pad(xf, ((0, Bp - B), (0, 0), (0, 0)), constant_values=1.0)

    # batch on the lane axis: (Bp, P, C) -> (P, C, Bp)
    xt = jnp.transpose(xf, (1, 2, 0))

    grid = (Bp // batch_tile,)
    out_t = pl.pallas_call(
        _dempster_kernel,
        out_shape=jax.ShapeDtypeStruct((C, Bp), x.dtype),
        grid_spec=pltpu.PrefetchScalarGridSpec(
            num_scalar_prefetch=0,
            grid=grid,
            in_specs=[pl.BlockSpec((P, C, batch_tile), lambda i: (0, 0, i))],
            out_specs=pl.BlockSpec((C, batch_tile), lambda i: (0, i)),
        ),
        compiler_params=pltpu.CompilerParams(
            dimension_semantics=("parallel",)),
    )(xt)

    out = jnp.transpose(out_t, (1, 0))[:B]     # (B, C)
    return jnp.reshape(out, tuple(lead) + (C,))


def ds3_dempster_ref(x):
    """Pure-JAX reference mirroring the PyTorch forward (per-iter normalize)."""
    m1 = x[..., 0, :]
    omega1 = x[..., 0, -1:]
    n_protos = x.shape[-2]
    for i in range(n_protos - 1):
        m2 = x[..., i + 1, :]
        omega2 = x[..., i + 1, -1:]
        c = m1 * m2 + m1 * omega2 + omega1 * m2
        c = c / jnp.sum(c, axis=-1, keepdims=True)
        m1 = c
        omega1 = c[..., -1:]
    return m1


if __name__ == "__main__":
    # Shapes consistent with the module: n_prototypes=4, num_class=4
    # => mass vectors of length num_class + 1 = 5 (last entry is omega).
    n_prototypes = 4
    num_class = 4
    C = num_class + 1

    key = jax.random.PRNGKey(0)
    k1, k2 = jax.random.split(key)

    # Case 1: flat batch, sized so the grid has 2 tiles (pipelining / megacore).
    B = 256
    raw = jax.random.uniform(k1, (B, n_prototypes, C), dtype=jnp.float32,
                             minval=0.1, maxval=1.0)
    x1 = raw / jnp.sum(raw, axis=-1, keepdims=True)
    out1 = jax.block_until_ready(ds3_dempster(x1))
    ref1 = jax.block_until_ready(ds3_dempster_ref(x1))
    np.testing.assert_allclose(np.asarray(out1), np.asarray(ref1),
                               rtol=1e-5, atol=5e-6)

    # Case 2: multi-dim leading batch (exercises flatten + lane padding path).
    raw2 = jax.random.uniform(k2, (2, 8, n_prototypes, C), dtype=jnp.float32,
                              minval=0.1, maxval=1.0)
    x2 = raw2 / jnp.sum(raw2, axis=-1, keepdims=True)
    out2 = jax.block_until_ready(ds3_dempster(x2))
    ref2 = jax.block_until_ready(ds3_dempster_ref(x2))
    np.testing.assert_allclose(np.asarray(out2), np.asarray(ref2),
                               rtol=1e-5, atol=5e-6)

    print("KERNEL_OK")
</pallas_src>

<mosaic_0001>
module attributes {stable_mosaic.version = 11 : i64} {
  func.func @_dempster_kernel(%arg0: i32, %arg1: memref<4x5x128xf32, #tpu.memory_space<vmem>>, %arg2: memref<5x128xf32, #tpu.memory_space<vmem>>) attributes {dimension_semantics = [#tpu.dimension_semantics<parallel>], iteration_bounds = array<i64: 2>, scalar_prefetch = 0 : i64, scratch_operands = 0 : i64, tpu.core_type = #tpu.core_type<tc>, window_params = [{transform_indices = @transform_0, window_bounds = array<i64: 4, 5, 128>}, {transform_indices = @transform_1, window_bounds = array<i64: 5, 128>}]} {
    %c0 = arith.constant 0 : index
    %c0_0 = arith.constant 0 : index
    %c0_1 = arith.constant 0 : index
    %0 = vector.load %arg1[%c0, %c0_0, %c0_1] : memref<4x5x128xf32, #tpu.memory_space<vmem>>, vector<1x5x128xf32>
    %1 = vector.shape_cast %0 : vector<1x5x128xf32> to vector<5x128xf32>
    %2 = vector.extract_strided_slice %1 {offsets = [4, 0], sizes = [1, 128], strides = [1, 1]} : vector<5x128xf32> to vector<1x128xf32>
    %c1 = arith.constant 1 : index
    %c0_2 = arith.constant 0 : index
    %c0_3 = arith.constant 0 : index
    %3 = vector.load %arg1[%c1, %c0_2, %c0_3] : memref<4x5x128xf32, #tpu.memory_space<vmem>>, vector<1x5x128xf32>
    %4 = vector.shape_cast %3 : vector<1x5x128xf32> to vector<5x128xf32>
    %5 = vector.extract_strided_slice %4 {offsets = [4, 0], sizes = [1, 128], strides = [1, 1]} : vector<5x128xf32> to vector<1x128xf32>
    %6 = vector.broadcast %5 : vector<1x128xf32> to vector<5x128xf32>
    %7 = arith.addf %4, %6 : vector<5x128xf32>
    %8 = arith.mulf %1, %7 : vector<5x128xf32>
    %9 = vector.broadcast %2 : vector<1x128xf32> to vector<5x128xf32>
    %10 = arith.mulf %9, %4 : vector<5x128xf32>
    %11 = arith.addf %8, %10 : vector<5x128xf32>
    %12 = vector.extract_strided_slice %11 {offsets = [4, 0], sizes = [1, 128], strides = [1, 1]} : vector<5x128xf32> to vector<1x128xf32>
    %c2 = arith.constant 2 : index
    %c0_4 = arith.constant 0 : index
    %c0_5 = arith.constant 0 : index
    %13 = vector.load %arg1[%c2, %c0_4, %c0_5] : memref<4x5x128xf32, #tpu.memory_space<vmem>>, vector<1x5x128xf32>
    %14 = vector.shape_cast %13 : vector<1x5x128xf32> to vector<5x128xf32>
    %15 = vector.extract_strided_slice %14 {offsets = [4, 0], sizes = [1, 128], strides = [1, 1]} : vector<5x128xf32> to vector<1x128xf32>
    %16 = vector.broadcast %15 : vector<1x128xf32> to vector<5x128xf32>
    %17 = arith.addf %14, %16 : vector<5x128xf32>
    %18 = arith.mulf %11, %17 : vector<5x128xf32>
    %19 = vector.broadcast %12 : vector<1x128xf32> to vector<5x128xf32>
    %20 = arith.mulf %19, %14 : vector<5x128xf32>
    %21 = arith.addf %18, %20 : vector<5x128xf32>
    %22 = vector.extract_strided_slice %21 {offsets = [4, 0], sizes = [1, 128], strides = [1, 1]} : vector<5x128xf32> to vector<1x128xf32>
    %c3 = arith.constant 3 : index
    %c0_6 = arith.constant 0 : index
    %c0_7 = arith.constant 0 : index
    %23 = vector.load %arg1[%c3, %c0_6, %c0_7] : memref<4x5x128xf32, #tpu.memory_space<vmem>>, vector<1x5x128xf32>
    %24 = vector.shape_cast %23 : vector<1x5x128xf32> to vector<5x128xf32>
    %25 = vector.extract_strided_slice %24 {offsets = [4, 0], sizes = [1, 128], strides = [1, 1]} : vector<5x128xf32> to vector<1x128xf32>
    %26 = vector.broadcast %25 : vector<1x128xf32> to vector<5x128xf32>
    %27 = arith.addf %24, %26 : vector<5x128xf32>
    %28 = arith.mulf %21, %27 : vector<5x128xf32>
    %29 = vector.broadcast %22 : vector<1x128xf32> to vector<5x128xf32>
    %30 = arith.mulf %29, %24 : vector<5x128xf32>
    %31 = arith.addf %28, %30 : vector<5x128xf32>
    %32 = vector.extract_strided_slice %31 {offsets = [0, 0], sizes = [1, 128], strides = [1, 1]} : vector<5x128xf32> to vector<1x128xf32>
    %33 = vector.extract_strided_slice %31 {offsets = [1, 0], sizes = [1, 128], strides = [1, 1]} : vector<5x128xf32> to vector<1x128xf32>
    %34 = arith.addf %32, %33 : vector<1x128xf32>
    %35 = vector.extract_strided_slice %31 {offsets = [2, 0], sizes = [1, 128], strides = [1, 1]} : vector<5x128xf32> to vector<1x128xf32>
    %36 = arith.addf %34, %35 : vector<1x128xf32>
    %37 = vector.extract_strided_slice %31 {offsets = [3, 0], sizes = [1, 128], strides = [1, 1]} : vector<5x128xf32> to vector<1x128xf32>
    %38 = arith.addf %36, %37 : vector<1x128xf32>
    %39 = vector.extract_strided_slice %31 {offsets = [4, 0], sizes = [1, 128], strides = [1, 1]} : vector<5x128xf32> to vector<1x128xf32>
    %40 = arith.addf %38, %39 : vector<1x128xf32>
    %41 = tpu.reciprocal %40 : vector<1x128xf32> -> vector<1x128xf32>
    %42 = vector.broadcast %41 : vector<1x128xf32> to vector<5x128xf32>
    %43 = arith.mulf %31, %42 : vector<5x128xf32>
    %c0_8 = arith.constant 0 : index
    %c0_9 = arith.constant 0 : index
    %44 = vector.load %arg2[%c0_8, %c0_9] : memref<5x128xf32, #tpu.memory_space<vmem>>, vector<5x128xf32>
    tpu.vector_store %arg2[%c0_8, %c0_9], %43 {strides = array<i32>} : memref<5x128xf32, #tpu.memory_space<vmem>>, vector<5x128xf32>,
    return
  }
  func.func @transform_0(%arg0: i32) -> (i32, i32, i32) {
    %c0_i32 = arith.constant 0 : i32
    %c0_i32_0 = arith.constant 0 : i32
    %c0_i32_1 = arith.constant 0 : i32
    return %c0_i32, %c0_i32_0, %arg0 : i32, i32, i32
  }
  func.func @transform_1(%arg0: i32) -> (i32, i32) {
    %c0_i32 = arith.constant 0 : i32
    %c0_i32_0 = arith.constant 0 : i32
    return %c0_i32, %arg0 : i32, i32
  }
}

</mosaic_0001>

<bundles_post_ra>
// kernel: tpu_custom_call.1
= control target key start
LH: loop header
LB: loop body
LE: loop exit
PB: predicated region body
PF: predicated region fallthrough
CT: control target
= control target key end

     0   :  { %6 = vsyncpa [#allocation4], 0  ;;  %s523_s0 = inlined_call_operand.vmem [shape: f32[4,5,256], index: 0, kind: input, shape index: {}]   ;;  %s524_s1 = inlined_call_operand.hbm [shape: f32[5,256], index: 1, kind: output, shape index: {}]  }
   0x1   :  { %8 = vsyncpa [#allocation4 + $0x1], 0  ;;  %s428_s6 = smov 0   ;;  %s430_s7 = smov 0  }
   0x2   :  { %s432_s8 = smov 0   ;;  %s434_s9 = smov 0  }
   0x3 LB: > { %s297_s10 = sadd.s32 4294967295, %s416_s9   ;;  %s298_s11 = sadd.s32 4294967294, %s416_s9   ;;  %s416_s9 = sphi %s434_s9, %s530_s9   ;;  %s412_s8 = sphi %s432_s8, %s529_s8   ;;  %s408_s7 = sphi %s430_s7, %s528_s7   ;;  %s404_s6 = sphi %s428_s6, %s527_s6  }
   0x4   : > { %s451_s12 = sadd.s32 1, %s416_s9   ;;  %s21_s13 = sadd.s32 1, %s412_s8 }
   0x5   : > { %s18_s14 = ssub.s32 %s416_s9, %s451_s12  ;;  %p28_p0 = scmp.ne.s32.totalorder %s412_s8, %s408_s7 }
   0x6   : > { %p19_p1 = scmp.eq.s32.totalorder %s18_s14, 0  ;;  %p29_p2 = scmp.eq.s32.totalorder %s416_s9, 0 }
   0x7   : > { %p58_p3 = scmp.eq.s32.totalorder %s297_s10, 1  ;;  %p63_p4 = scmp.ne.s32.totalorder %s408_s7, %s404_s6 }
   0x8   : > { %s464_s15 = scalar_select %p19_p1, %s412_s8, %s21_s13  }
   0x9   : > { %p30_p5 = por %p29_p2, %p28_p0  ;;  %p466_p6 = por %p58_p3, %p28_p0 }
   0xa   : > { %p64_p7 = scmp.eq.s32.totalorder %s298_s11, 1  ;;  %p300_p9 = scmp.ge.s32.totalorder %s416_s9, 2 }
   0xc   : > { %p470_p8 = por %p64_p7, %p63_p4  ;;  %80 = sbr.rel (%p300_p9) target bundleno = 25 (0x19), region = 16 }
  0x11   : > { %83 = sbr.rel (!%p30_p5) target bundleno = 25 (0x19), region = 20  ;;  %s85_s18 = sand.u32 (%p30_p5), 1, %s412_s8  }
  0x12   : > { %s302_s19 = sshll.u32 (%p30_p5), %s416_s9, 3  ;;  %s301_s20 = sshll.u32 (%p30_p5), %s85_s18, 5 }
  0x13   : > { %s89_s23 = scalar_lea.vmem (%p30_p5), %s523_s0, %s302_s19  ;;  %s87_s24 = scalar_lea.vmem (%p30_p5), [#allocation2], %s301_s20 }
  0x14   : > { %v124_v0 = vld [vmem:[%s89_s23] sm:$0xff] (%p30_p5)  ;;  %v126_v1 = vld [vmem:[%s89_s23 + $0x10] sm:$0xff] (%p30_p5) }
  0x15   : > { %v128_v2 = vld [vmem:[%s89_s23 + $0x20] sm:$0xff] (%p30_p5)  ;;  %125 = vst [vmem:[%s87_s24] sm:$0xff] (%p30_p5), %v124_v0  ;;  %v130_v3 = vld [vmem:[%s89_s23 + $0x30] sm:$0xff] (%p30_p5) }
  0x16   : > { %127 = vst [vmem:[%s87_s24 + $0x8] sm:$0xff] %v126_v1 }
  0x17   : > { %129 = vst [vmem:[%s87_s24 + $0x10] sm:$0xff] %v128_v2 }
  0x18   : > { %131 = vst [vmem:[%s87_s24 + $0x18] sm:$0xff] %v130_v3 }
  0x19 PF: > { %p303_p10 = scmp.ge.s32.totalorder %s416_s9, 1  ;;  %p136_p11 = scmp.lt.s32.totalorder %s416_s9, 3 }
  0x1b   : > { %p137_p12 = pnand %p303_p10, %p136_p11 }
  0x1c   : > { %s485_s25 = sand.u32 (!%p137_p12), 1, %s408_s7   ;;  %s310_s29 = sshll.u32 (!%p137_p12), %s297_s10, 3 }
  0x1d   : > { %140 = sbr.rel (%p137_p12) target bundleno = 89 (0x59), region = 58  ;;  %s304_s26 = sshll.u32 (!%p137_p12), %s485_s25, 5 }
  0x1e   : > { %s145_s27 = scalar_lea.vmem (!%p137_p12), [#allocation2], %s304_s26  ;;  %s305_s28 = sshll.u32 (!%p137_p12), %s485_s25, 3 }
  0x1f   : > { %s228_s3 = scalar_lea.hbm (!%p137_p12), %s524_s1, %s310_s29  ;;  %s161_s4 = scalar_lea.vmem (!%p137_p12), [#allocation3], %s305_s28 }
  0x20   : > { %s230_s5 = sshll.u32 (!%p137_p12), %s161_s4, 4  ;;  %s232_s11 = sshll.u32 (!%p137_p12), %s228_s3, 4  ;;  %s231_s5 = int_to_ptr.vmem [resolvable:$true] %s230_s5  ;;  %s233_s11 = int_to_ptr.hbm [resolvable:$true] %s232_s11 }
  0x21   : > { %s218_s10 = scalar_lea.sflag (!%p137_p12), [#allocation4], %s485_s25  ;;  %s368_s13 = sshra.s32 (!%p137_p12), %s233_s11, 4  ;;  %s369_s13 = int_to_ptr.hbm [resolvable:$true] %s368_s13 }
  0x22   : > { %v162_v4 = vld [vmem:[%s145_s27] sm:$0x1f]  ;;  %v306_v5 = vld [vmem:[%s145_s27 + $0x8] sm:$0x1f]  ;;  %v307_v6 = vld [vmem:[%s145_s27 + $0x10] sm:$0x1f]  ;;  %p375_p2 = scmp.lt.s32.totalorder %s369_s13, %s524_s1 }
  0x23   : > { %v165_v7 = vperm.slane %v306_v5, 4  ;;  %v168_v8 = vperm.slane %v162_v4, 4  ;;  %v173_v9 = vperm.slane %v307_v6, 4  ;;  %v308_v12 = vld [vmem:[%s145_s27 + $0x18] sm:$0x1f]  ;;  %s370_s14 = scalar_lea.hbm %s369_s13, 8 }
  0x24   : > { %v181_v16 = vperm.slane %v308_v12, 4  ;;  %p371_p13 = scmp.ne.s32.totalorder %s369_s13, %s370_s14  ;;  %s374_s20 = scalar_lea.hbm %s524_s1, 16 }
  0x25   : > { %v166_v10 = vadd.f32 %v306_v5, %v165_v7  ;;  %v169_v11 = vmul.f32 %v306_v5, %v168_v8  ;;  %v174_v14 = vadd.f32 %v307_v6, %v173_v9  ;;  %p376_p3 = scmp.lt.s32.totalorder %s374_s20, %s370_s14 }
  0x26   : > { %v182_v20 = vadd.f32 %v308_v12, %v181_v16  ;;  %p372_p0 = pnand %p371_p13, %p466_p6 }
  0x27   : > { %v167_v13 = vmul.f32 %v166_v10, %v162_v4  ;;  %p377_p4 = por %p376_p3, %p375_p2 }
  0x28   : > { %p373_p1 = pneg %p372_p0 }
  0x29   : > { %v170_v15 = vadd.f32 %v169_v11, %v167_v13 }
  0x2a   : > { %p378_p5 = pnand %p377_p4, %p373_p1 }
  0x2b   : > { %v175_v17 = vmul.f32 %v174_v14, %v170_v15  ;;  %v176_v18 = vperm.slane %v170_v15, 4 }
  0x2d   : > { %v177_v19 = vmul.f32 %v307_v6, %v176_v18 }
  0x2f   : > { %v178_v21 = vadd.f32 %v177_v19, %v175_v17 }
  0x31   : > { %v183_v22 = vmul.f32 %v182_v20, %v178_v21  ;;  %v184_v23 = vperm.slane %v178_v21, 4 }
  0x33   : > { %v185_v24 = vmul.f32 %v308_v12, %v184_v23 }
  0x35   : > { %v186_v25 = vadd.f32 %v185_v24, %v183_v22 }
  0x37   : > { %v188_v26 = vrot.slane %v186_v25, 1  ;;  %v191_v27 = vrot.slane %v186_v25, 2  ;;  %v194_v29 = vrot.slane %v186_v25, 3  ;;  %v197_v31 = vrot.slane %v186_v25, 4 }
  0x39   : > { %v190_v28 = vadd.f32 %v188_v26, %v186_v25 }
  0x3b   : > { %v193_v30 = vadd.f32 %v191_v27, %v190_v28 }
  0x3d   : > { %v196_v32 = vadd.f32 %v194_v29, %v193_v30 }
  0x3f   : > { %v199_v33 = vadd.f32 %v197_v31, %v196_v32 }
  0x41   : > { %352 = vrcp.f32 %v199_v33  ;;  %v211_v36 = vand.u32 2147483648, %v199_v33  ;;  %vm205_vm0 = vweird.f32 %v199_v33  ;;  %v209_v38 = vand.u32 2147483647, %v199_v33 }
  0x43   : > { %v212_v40 = vor.u32 1.1754944e-38, %v211_v36  ;;  %vm210_vm3 = vcmp.eq.f32.partialorder %v209_v38, 8.507059e+37 }
  0x47   : > { %v353_v34 = vpop.eup %352 }
  0x48   : > { %v201_v35 = vmul.f32 %v353_v34, %v199_v33  ;;  %vm206_vm1 = vweird.f32 %v353_v34 }
  0x49   : > { %vm207_vm2 = vmor %vm205_vm0, %vm206_vm1 }
  0x4a   : > { %v202_v37 = vsub.f32 1.0, %v201_v35 }
  0x4c   : > { %v203_v39 = vmul.f32 %v353_v34, %v202_v37 }
  0x4e   : > { %v204_v41 = vadd.f32 %v353_v34, %v203_v39 }
  0x50   : > { %v208_v42 = vsel %vm207_vm2, %v353_v34, %v204_v41 }
  0x51   : > { %v213_v43 = vsel %vm210_vm3, %v212_v40, %v208_v42 }
  0x52   : > { %v214_v44 = vperm.slane %v213_v43, 0 }
  0x54   : > { %v215_v45 = vmul.f32 %v214_v44, %v186_v25 }
  0x56   : > { %216 = vst [vmem:[%s161_s4] sm:$0x1f] %v215_v45 }
  0x57   : > { %381 = shalt.err (!%p378_p5)
}
  0x58   : > { %313 = dma.vmem_to_hbm [thread:$0]  (%p466_p6), %s231_s5, 128, %s233_s11, %s218_s10  }
  0x59 PF: > { %s244_s23 = sand.u32 1, %s404_s6   ;;  %p316_p7 = pnand %p300_p9, %p470_p8 }
  0x5a   : > { %s245_s24 = scalar_lea.sflag [#allocation4], %s244_s23 }
  0x5b   : > { %p317_p10 = pneg %p316_p7 }
  0x5d   : > { %399 = dma.done.wait (%p317_p10), %s245_s24, 128  }
  0x5e   : > { %401 = vsyncadd (%p317_p10), %s245_s24, 4294967168  ;;  %p11_p11 = scmp.ge.s32.totalorder %s451_s12, 4   ;;  %s527_s6 = smov %s408_s7 }
  0x5f   : > { %s528_s7 = smov %s412_s8  ;;  %s529_s8 = smov %s464_s15 }
  0x60   : > { %s530_s9 = smov %s451_s12  ;;  %13 = sbr.rel (!%p11_p11) target bundleno = 3 (0x3), region = 105 }
  0x65   :  { %251 = vsyncpa [#allocation4], 1 }
  0x66   :  { %253 = vsyncpa [#allocation4 + $0x1], 1 }

</bundles_post_ra>
